<compile_context>
chip_gen: v6e
topology: v6e:2x2x1
jax: 0.10.0
libtpu: 0.0.40
codegen_flags: <defaults>
</compile_context>

<pallas_src>
import functools
from collections import namedtuple

import numpy as np
import jax
import jax.numpy as jnp
from jax.experimental import pallas as pl
from jax.experimental.pallas import tpu as pltpu

LossTuple = namedtuple(
    "LossTuple",
    ["rpn_loc_loss", "rpn_cls_loss", "roi_loc_loss", "roi_cls_loss", "total_loss"],
)


# ---------------------------------------------------------------------------
# In-kernel helpers (VPU elementwise + cheap reductions; no MXU).
# ---------------------------------------------------------------------------
def _smooth_l1_sum(diff, sigma):
    sigma2 = sigma * sigma
    ad = jnp.abs(diff)
    y = jnp.where(ad < (1.0 / sigma2), (0.5 * sigma2) * diff * diff, ad - 0.5 / sigma2)
    return jnp.sum(y)


def _ce_sum(logits, label_f, mask):
    """logits [C, N] f32, label_f [1, N] f32 (exact small ints), mask [1,N] or scalar.

    Returns sum over N of mask * cross_entropy(logits[:, n], label[n])."""
    m = jnp.max(logits, axis=0, keepdims=True)                             # [1, N]
    lse = m + jnp.log(jnp.sum(jnp.exp(logits - m), axis=0, keepdims=True))  # [1, N]
    row = jax.lax.broadcasted_iota(jnp.int32, logits.shape, 0).astype(jnp.float32)
    onehot = (row == label_f).astype(jnp.float32)                          # [C, N]
    logit_t = jnp.sum(onehot * logits, axis=0, keepdims=True)              # [1, N]
    return jnp.sum(mask * (lse - logit_t))


# ---------------------------------------------------------------------------
# Fused kernel: all four losses + total in one invocation, two packed inputs.
# ---------------------------------------------------------------------------
def _fused_loss_kernel(
    rpn_ref,   # [11, Na]   f32: rows 0-3 rpn_loc, 4-7 gt_rpn_loc, 8-9 rpn_score, 10 label
    roi_ref,   # [5C+5, Ns] f32: rows 0..4C-1 roi_cls_loc, 4C..5C-1 roi_score,
               #                 5C..5C+3 gt_roi_loc, 5C+4 label
    out_ref,   # [8, 128]   f32: row 0 lanes 0..4 = losses
    *, rpn_sigma, roi_sigma, n_class, n_sample,
):
    f32 = jnp.float32
    C = n_class

    # ---- RPN losses ---------------------------------------------------------
    rpn = rpn_ref[...]                              # (11, Na)
    rpn_loc = rpn[0:4, :]
    gt_rpn_loc = rpn[4:8, :]
    rpn_score = rpn[8:10, :]
    rpn_label = rpn[10:11, :]                       # f32, exact {-1, 0, 1}

    pos = (rpn_label > 0.0).astype(f32)             # in_weight (foreground anchors)
    valid = (rpn_label >= 0.0).astype(f32)          # ignore_index == -1 mask
    rpn_norm = jnp.sum(valid)                       # (gt_label >= 0).sum() == CE count
    # NOTE: division by zero -> NaN, matching the PyTorch reference behavior.
    rpn_loc_loss = _smooth_l1_sum(pos * (rpn_loc - gt_rpn_loc), rpn_sigma) / rpn_norm
    rpn_cls_loss = _ce_sum(rpn_score, rpn_label, valid) / rpn_norm

    # ---- ROI losses ---------------------------------------------------------
    roi = roi_ref[...]                              # (5C+5, Ns)
    rcl = roi[0:4 * C, :]                           # (4C, Ns)
    roi_score = roi[4 * C:5 * C, :]                 # (C, Ns)
    gt_roi_loc = roi[5 * C:5 * C + 4, :]            # (4, Ns)
    roi_label = roi[5 * C + 4:5 * C + 5, :]         # (1, Ns) f32, exact 0..C-1

    # Class-specific loc selection fused with in_weight (only label > 0 contributes,
    # exactly reproducing the gather + foreground mask of the reference).
    roi_diff = jnp.zeros_like(gt_roi_loc)           # (4, Ns)
    for c in range(1, C):
        sel = (roi_label == float(c)).astype(f32)   # (1, Ns)
        roi_diff = roi_diff + sel * (rcl[4 * c:4 * c + 4, :] - gt_roi_loc)
    roi_norm = float(n_sample)                      # ROI labels are all >= 0 by construction
    roi_loc_loss = _smooth_l1_sum(roi_diff, roi_sigma) / roi_norm
    roi_cls_loss = _ce_sum(roi_score, roi_label, 1.0) / roi_norm

    total = rpn_loc_loss + rpn_cls_loss + roi_loc_loss + roi_cls_loss

    # ---- Single dense (8, 128) output store ---------------------------------
    lane = jax.lax.broadcasted_iota(jnp.int32, out_ref.shape, 1)
    out_ref[...] = (
        jnp.where(lane == 0, rpn_loc_loss, 0.0)
        + jnp.where(lane == 1, rpn_cls_loss, 0.0)
        + jnp.where(lane == 2, roi_loc_loss, 0.0)
        + jnp.where(lane == 3, roi_cls_loss, 0.0)
        + jnp.where(lane == 4, total, 0.0)
    ).astype(f32)


# ---------------------------------------------------------------------------
# Wrapper: layout plumbing (cast / transpose / pack) + one pallas_call,
# all fused under a single jit.  Returns a (5,) f32 vector:
#   [rpn_loc, rpn_cls, roi_loc, roi_cls, total]
# ---------------------------------------------------------------------------
@functools.partial(jax.jit, static_argnames=("rpn_sigma", "roi_sigma"))
def faster_rcnn_trainer_losses(
    rpn_loc, rpn_score, gt_rpn_loc, gt_rpn_label,
    roi_cls_loc, roi_score, gt_roi_loc, gt_roi_label,
    rpn_sigma=3.0, roi_sigma=1.0,
):
    f32 = jnp.float32
    n_anchor = rpn_loc.shape[0]
    n_sample, n_class = roi_score.shape

    # Packed, lane-dense operands (N on the 128-lane axis): 2 input DMAs total.
    rpn_packed = jnp.concatenate(
        [
            rpn_loc.astype(f32).T,                          # (4, Na)
            gt_rpn_loc.astype(f32).T,                       # (4, Na)
            rpn_score.astype(f32).T,                        # (2, Na)
            gt_rpn_label.astype(f32).reshape(1, n_anchor),  # (1, Na) exact small ints
        ],
        axis=0,
    )                                                       # (11, Na)
    roi_packed = jnp.concatenate(
        [
            roi_cls_loc.astype(f32).T,                      # (4C, Ns)
            roi_score.astype(f32).T,                        # (C, Ns)
            gt_roi_loc.astype(f32).T,                       # (4, Ns)
            gt_roi_label.astype(f32).reshape(1, n_sample),  # (1, Ns) exact small ints
        ],
        axis=0,
    )                                                       # (5C+5, Ns)

    kernel = functools.partial(
        _fused_loss_kernel,
        rpn_sigma=float(rpn_sigma),
        roi_sigma=float(roi_sigma),
        n_class=int(n_class),
        n_sample=int(n_sample),
    )

    out = pl.pallas_call(
        kernel,
        out_shape=jax.ShapeDtypeStruct((8, 128), jnp.float32),
        in_specs=[
            pl.BlockSpec(memory_space=pltpu.MemorySpace.VMEM),
            pl.BlockSpec(memory_space=pltpu.MemorySpace.VMEM),
        ],
        out_specs=pl.BlockSpec(memory_space=pltpu.MemorySpace.VMEM),
    )(rpn_packed, roi_packed)

    return out[0, :5]   # single slice read: [rpn_loc, rpn_cls, roi_loc, roi_cls, total]


# ---------------------------------------------------------------------------
# Pure-JAX reference (mirrors the PyTorch formulas) for a correctness check.
# ---------------------------------------------------------------------------
def _ref_loc_loss(pred, gt, label, sigma):
    sigma2 = sigma * sigma
    in_w = (label > 0).astype(jnp.float32)[:, None]
    diff = in_w * (pred - gt)
    ad = jnp.abs(diff)
    flag = (ad < 1.0 / sigma2).astype(jnp.float32)
    y = flag * (sigma2 / 2.0) * diff ** 2 + (1 - flag) * (ad - 0.5 / sigma2)
    return jnp.sum(y) / jnp.sum((label >= 0).astype(jnp.float32))


def _ref_ce(logits, labels):
    mask = labels >= 0
    safe = jnp.where(mask, labels, 0)
    lse = jax.nn.logsumexp(logits, axis=-1)
    lt = jnp.take_along_axis(logits, safe[:, None], axis=-1)[:, 0]
    per = jnp.where(mask, lse - lt, 0.0)
    return jnp.sum(per) / jnp.sum(mask.astype(jnp.float32))


if __name__ == "__main__":
    key = jax.random.PRNGKey(0)
    ks = jax.random.split(key, 9)

    # Small shapes consistent with the forward: batch 1 (hard requirement).
    H = W = 16
    imgs = jax.random.normal(ks[0], (1, 3, H, W), jnp.float32)  # NCHW, shape-only

    N_ANCHOR = 256   # anchors produced by the RPN over the feature map
    N_SAMPLE = 128   # ROIs sampled by ProposalTargetCreator
    N_CLASS = 5      # 4 foreground classes + background

    # Synthesized network outputs (extractor / rpn / head are external; see TODO).
    rpn_loc = jax.random.normal(ks[1], (N_ANCHOR, 4), jnp.float32)
    rpn_score = jax.random.normal(ks[2], (N_ANCHOR, 2), jnp.float32)
    roi_cls_loc = jax.random.normal(ks[3], (N_SAMPLE, N_CLASS * 4), jnp.float32)
    roi_score = jax.random.normal(ks[4], (N_SAMPLE, N_CLASS), jnp.float32)

    # Synthesized target-creator outputs.
    gt_rpn_loc = jax.random.normal(ks[5], (N_ANCHOR, 4), jnp.float32)
    gt_rpn_label = jax.random.randint(ks[6], (N_ANCHOR,), -1, 2, jnp.int32)   # {-1,0,1}
    gt_roi_loc = jax.random.normal(ks[7], (N_SAMPLE, 4), jnp.float32)
    gt_roi_label = jax.random.randint(ks[8], (N_SAMPLE,), 0, N_CLASS, jnp.int32)

    rpn_sigma, roi_sigma = 3.0, 1.0   # opt.rpn_sigma, opt.roi_sigma defaults

    vec = faster_rcnn_trainer_losses(
        rpn_loc, rpn_score, gt_rpn_loc, gt_rpn_label,
        roi_cls_loc, roi_score, gt_roi_loc, gt_roi_label,
        rpn_sigma=rpn_sigma, roi_sigma=roi_sigma,
    )
    jax.block_until_ready(vec)
    losses = LossTuple(*np.asarray(vec).tolist())

    # Reference check (pure JAX, same formulas as the PyTorch code).
    rcl = roi_cls_loc.reshape(N_SAMPLE, -1, 4)
    roi_loc_ref = rcl[jnp.arange(N_SAMPLE), gt_roi_label]
    ref = (
        float(_ref_loc_loss(rpn_loc, gt_rpn_loc, gt_rpn_label, rpn_sigma)),
        float(_ref_ce(rpn_score, gt_rpn_label)),
        float(_ref_loc_loss(roi_loc_ref, gt_roi_loc, gt_roi_label, roi_sigma)),
        float(_ref_ce(roi_score, gt_roi_label)),
    )
    got = (losses.rpn_loc_loss, losses.rpn_cls_loss,
           losses.roi_loc_loss, losses.roi_cls_loss)
    for g, r in zip(got, ref):
        assert np.allclose(g, r, rtol=1e-4, atol=1e-4), (g, r)
    assert np.allclose(losses.total_loss, sum(ref), rtol=1e-4, atol=1e-4)

    print("KERNEL_OK")
</pallas_src>

<mosaic_0001>
module attributes {stable_mosaic.version = 11 : i64} {
  func.func @_fused_loss_kernel(%arg0: memref<11x256xf32, #tpu.memory_space<vmem>>, %arg1: memref<30x128xf32, #tpu.memory_space<vmem>>, %arg2: memref<8x128xf32, #tpu.memory_space<vmem>>) attributes {dimension_semantics = [], scalar_prefetch = 0 : i64, scratch_operands = 0 : i64, tpu.core_type = #tpu.core_type<tc>} {
    %c0 = arith.constant 0 : index
    %c0_0 = arith.constant 0 : index
    %0 = vector.load %arg0[%c0, %c0_0] : memref<11x256xf32, #tpu.memory_space<vmem>>, vector<11x256xf32>
    %1 = vector.extract_strided_slice %0 {offsets = [0, 0], sizes = [4, 256], strides = [1, 1]} : vector<11x256xf32> to vector<4x256xf32>
    %2 = vector.extract_strided_slice %0 {offsets = [4, 0], sizes = [4, 256], strides = [1, 1]} : vector<11x256xf32> to vector<4x256xf32>
    %3 = vector.extract_strided_slice %0 {offsets = [8, 0], sizes = [2, 256], strides = [1, 1]} : vector<11x256xf32> to vector<2x256xf32>
    %4 = vector.extract_strided_slice %0 {offsets = [10, 0], sizes = [1, 256], strides = [1, 1]} : vector<11x256xf32> to vector<1x256xf32>
    %cst = arith.constant 0.000000e+00 : f32
    %5 = vector.broadcast %cst : f32 to vector<1x256xf32>
    %6 = arith.cmpf ogt, %4, %5 : vector<1x256xf32>
    %7 = arith.extui %6 : vector<1x256xi1> to vector<1x256xi32>
    %8 = arith.sitofp %7 : vector<1x256xi32> to vector<1x256xf32>
    %cst_1 = arith.constant 0.000000e+00 : f32
    %9 = vector.broadcast %cst_1 : f32 to vector<1x256xf32>
    %10 = arith.cmpf oge, %4, %9 : vector<1x256xf32>
    %11 = arith.extui %10 : vector<1x256xi1> to vector<1x256xi32>
    %12 = arith.sitofp %11 : vector<1x256xi32> to vector<1x256xf32>
    %13 = vector.shape_cast %12 : vector<1x256xf32> to vector<1x1x256xf32>
    %cst_2 = arith.constant dense<0.000000e+00> : vector<1xf32>
    %14 = vector.multi_reduction <add>, %13, %cst_2 [1, 2] : vector<1x1x256xf32> to vector<1xf32>
    %15 = vector.shape_cast %14 : vector<1xf32> to vector<1x1x1xf32>
    %16 = vector.extract %15[0, 0, 0] : f32 from vector<1x1x1xf32>
    %17 = arith.subf %1, %2 : vector<4x256xf32>
    %18 = vector.broadcast %8 : vector<1x256xf32> to vector<4x256xf32>
    %19 = arith.mulf %18, %17 : vector<4x256xf32>
    %20 = math.absf %19 : vector<4x256xf32>
    %cst_3 = arith.constant 0.111111112 : f32
    %21 = vector.broadcast %cst_3 : f32 to vector<4x256xf32>
    %22 = arith.cmpf olt, %20, %21 : vector<4x256xf32>
    %cst_4 = arith.constant 4.500000e+00 : f32
    %23 = vector.broadcast %cst_4 : f32 to vector<4x256xf32>
    %24 = arith.mulf %23, %19 : vector<4x256xf32>
    %25 = arith.mulf %24, %19 : vector<4x256xf32>
    %cst_5 = arith.constant 0.055555556 : f32
    %26 = vector.broadcast %cst_5 : f32 to vector<4x256xf32>
    %27 = arith.subf %20, %26 : vector<4x256xf32>
    %28 = arith.select %22, %25, %27 : vector<4x256xi1>, vector<4x256xf32>
    %29 = vector.shape_cast %28 : vector<4x256xf32> to vector<1x4x256xf32>
    %cst_6 = arith.constant dense<0.000000e+00> : vector<1xf32>
    %30 = vector.multi_reduction <add>, %29, %cst_6 [1, 2] : vector<1x4x256xf32> to vector<1xf32>
    %31 = vector.shape_cast %30 : vector<1xf32> to vector<1x1x1xf32>
    %32 = vector.extract %31[0, 0, 0] : f32 from vector<1x1x1xf32>
    %33 = arith.divf %32, %16 : f32
    %cst_7 = arith.constant dense<0xFF800000> : vector<256xf32>
    %34 = vector.multi_reduction <maximumf>, %3, %cst_7 [0] : vector<2x256xf32> to vector<256xf32>
    %35 = vector.shape_cast %34 : vector<256xf32> to vector<1x256xf32>
    %36 = vector.broadcast %35 : vector<1x256xf32> to vector<2x256xf32>
    %37 = arith.subf %3, %36 : vector<2x256xf32>
    %38 = math.exp %37 : vector<2x256xf32>
    %cst_8 = arith.constant dense<0.000000e+00> : vector<256xf32>
    %39 = vector.multi_reduction <add>, %38, %cst_8 [0] : vector<2x256xf32> to vector<256xf32>
    %40 = vector.shape_cast %39 : vector<256xf32> to vector<1x256xf32>
    %41 = math.log %40 : vector<1x256xf32>
    %42 = arith.addf %35, %41 : vector<1x256xf32>
    %43 = tpu.iota {dimensions = array<i32: 0>} : vector<2x256xi32>
    %44 = arith.sitofp %43 : vector<2x256xi32> to vector<2x256xf32>
    %45 = vector.broadcast %4 : vector<1x256xf32> to vector<2x256xf32>
    %46 = arith.cmpf oeq, %44, %45 : vector<2x256xf32>
    %47 = arith.extui %46 : vector<2x256xi1> to vector<2x256xi32>
    %48 = arith.sitofp %47 : vector<2x256xi32> to vector<2x256xf32>
    %49 = arith.mulf %48, %3 : vector<2x256xf32>
    %cst_9 = arith.constant dense<0.000000e+00> : vector<256xf32>
    %50 = vector.multi_reduction <add>, %49, %cst_9 [0] : vector<2x256xf32> to vector<256xf32>
    %51 = vector.shape_cast %50 : vector<256xf32> to vector<1x256xf32>
    %52 = arith.subf %42, %51 : vector<1x256xf32>
    %53 = arith.mulf %12, %52 : vector<1x256xf32>
    %54 = vector.shape_cast %53 : vector<1x256xf32> to vector<1x1x256xf32>
    %cst_10 = arith.constant dense<0.000000e+00> : vector<1xf32>
    %55 = vector.multi_reduction <add>, %54, %cst_10 [1, 2] : vector<1x1x256xf32> to vector<1xf32>
    %56 = vector.shape_cast %55 : vector<1xf32> to vector<1x1x1xf32>
    %57 = vector.extract %56[0, 0, 0] : f32 from vector<1x1x1xf32>
    %58 = arith.divf %57, %16 : f32
    %c0_11 = arith.constant 0 : index
    %c0_12 = arith.constant 0 : index
    %59 = vector.load %arg1[%c0_11, %c0_12] : memref<30x128xf32, #tpu.memory_space<vmem>>, vector<30x128xf32>
    %60 = vector.extract_strided_slice %59 {offsets = [0, 0], sizes = [20, 128], strides = [1, 1]} : vector<30x128xf32> to vector<20x128xf32>
    %61 = vector.extract_strided_slice %59 {offsets = [20, 0], sizes = [5, 128], strides = [1, 1]} : vector<30x128xf32> to vector<5x128xf32>
    %62 = vector.extract_strided_slice %59 {offsets = [25, 0], sizes = [4, 128], strides = [1, 1]} : vector<30x128xf32> to vector<4x128xf32>
    %63 = vector.extract_strided_slice %59 {offsets = [29, 0], sizes = [1, 128], strides = [1, 1]} : vector<30x128xf32> to vector<1x128xf32>
    %cst_13 = arith.constant 0.000000e+00 : f32
    %64 = vector.broadcast %cst_13 : f32 to vector<4x128xf32>
    %cst_14 = arith.constant 1.000000e+00 : f32
    %65 = vector.broadcast %cst_14 : f32 to vector<1x128xf32>
    %66 = arith.cmpf oeq, %63, %65 : vector<1x128xf32>
    %67 = arith.extui %66 : vector<1x128xi1> to vector<1x128xi32>
    %68 = arith.sitofp %67 : vector<1x128xi32> to vector<1x128xf32>
    %69 = vector.extract_strided_slice %60 {offsets = [4, 0], sizes = [4, 128], strides = [1, 1]} : vector<20x128xf32> to vector<4x128xf32>
    %70 = arith.subf %69, %62 : vector<4x128xf32>
    %71 = vector.broadcast %68 : vector<1x128xf32> to vector<4x128xf32>
    %72 = arith.mulf %71, %70 : vector<4x128xf32>
    %73 = arith.addf %64, %72 : vector<4x128xf32>
    %cst_15 = arith.constant 2.000000e+00 : f32
    %74 = vector.broadcast %cst_15 : f32 to vector<1x128xf32>
    %75 = arith.cmpf oeq, %63, %74 : vector<1x128xf32>
    %76 = arith.extui %75 : vector<1x128xi1> to vector<1x128xi32>
    %77 = arith.sitofp %76 : vector<1x128xi32> to vector<1x128xf32>
    %78 = vector.extract_strided_slice %60 {offsets = [8, 0], sizes = [4, 128], strides = [1, 1]} : vector<20x128xf32> to vector<4x128xf32>
    %79 = arith.subf %78, %62 : vector<4x128xf32>
    %80 = vector.broadcast %77 : vector<1x128xf32> to vector<4x128xf32>
    %81 = arith.mulf %80, %79 : vector<4x128xf32>
    %82 = arith.addf %73, %81 : vector<4x128xf32>
    %cst_16 = arith.constant 3.000000e+00 : f32
    %83 = vector.broadcast %cst_16 : f32 to vector<1x128xf32>
    %84 = arith.cmpf oeq, %63, %83 : vector<1x128xf32>
    %85 = arith.extui %84 : vector<1x128xi1> to vector<1x128xi32>
    %86 = arith.sitofp %85 : vector<1x128xi32> to vector<1x128xf32>
    %87 = vector.extract_strided_slice %60 {offsets = [12, 0], sizes = [4, 128], strides = [1, 1]} : vector<20x128xf32> to vector<4x128xf32>
    %88 = arith.subf %87, %62 : vector<4x128xf32>
    %89 = vector.broadcast %86 : vector<1x128xf32> to vector<4x128xf32>
    %90 = arith.mulf %89, %88 : vector<4x128xf32>
    %91 = arith.addf %82, %90 : vector<4x128xf32>
    %cst_17 = arith.constant 4.000000e+00 : f32
    %92 = vector.broadcast %cst_17 : f32 to vector<1x128xf32>
    %93 = arith.cmpf oeq, %63, %92 : vector<1x128xf32>
    %94 = arith.extui %93 : vector<1x128xi1> to vector<1x128xi32>
    %95 = arith.sitofp %94 : vector<1x128xi32> to vector<1x128xf32>
    %96 = vector.extract_strided_slice %60 {offsets = [16, 0], sizes = [4, 128], strides = [1, 1]} : vector<20x128xf32> to vector<4x128xf32>
    %97 = arith.subf %96, %62 : vector<4x128xf32>
    %98 = vector.broadcast %95 : vector<1x128xf32> to vector<4x128xf32>
    %99 = arith.mulf %98, %97 : vector<4x128xf32>
    %100 = arith.addf %91, %99 : vector<4x128xf32>
    %101 = math.absf %100 : vector<4x128xf32>
    %cst_18 = arith.constant 1.000000e+00 : f32
    %102 = vector.broadcast %cst_18 : f32 to vector<4x128xf32>
    %103 = arith.cmpf olt, %101, %102 : vector<4x128xf32>
    %cst_19 = arith.constant 5.000000e-01 : f32
    %104 = vector.broadcast %cst_19 : f32 to vector<4x128xf32>
    %105 = arith.mulf %104, %100 : vector<4x128xf32>
    %106 = arith.mulf %105, %100 : vector<4x128xf32>
    %cst_20 = arith.constant 5.000000e-01 : f32
    %107 = vector.broadcast %cst_20 : f32 to vector<4x128xf32>
    %108 = arith.subf %101, %107 : vector<4x128xf32>
    %109 = arith.select %103, %106, %108 : vector<4x128xi1>, vector<4x128xf32>
    %110 = vector.shape_cast %109 : vector<4x128xf32> to vector<1x4x128xf32>
    %cst_21 = arith.constant dense<0.000000e+00> : vector<1xf32>
    %111 = vector.multi_reduction <add>, %110, %cst_21 [1, 2] : vector<1x4x128xf32> to vector<1xf32>
    %112 = vector.shape_cast %111 : vector<1xf32> to vector<1x1x1xf32>
    %113 = vector.extract %112[0, 0, 0] : f32 from vector<1x1x1xf32>
    %cst_22 = arith.constant 1.280000e+02 : f32
    %114 = arith.divf %113, %cst_22 : f32
    %cst_23 = arith.constant dense<0xFF800000> : vector<128xf32>
    %115 = vector.multi_reduction <maximumf>, %61, %cst_23 [0] : vector<5x128xf32> to vector<128xf32>
    %116 = vector.shape_cast %115 : vector<128xf32> to vector<1x128xf32>
    %117 = vector.broadcast %116 : vector<1x128xf32> to vector<5x128xf32>
    %118 = arith.subf %61, %117 : vector<5x128xf32>
    %119 = math.exp %118 : vector<5x128xf32>
    %cst_24 = arith.constant dense<0.000000e+00> : vector<128xf32>
    %120 = vector.multi_reduction <add>, %119, %cst_24 [0] : vector<5x128xf32> to vector<128xf32>
    %121 = vector.shape_cast %120 : vector<128xf32> to vector<1x128xf32>
    %122 = math.log %121 : vector<1x128xf32>
    %123 = arith.addf %116, %122 : vector<1x128xf32>
    %124 = tpu.iota {dimensions = array<i32: 0>} : vector<5x128xi32>
    %125 = arith.sitofp %124 : vector<5x128xi32> to vector<5x128xf32>
    %126 = vector.broadcast %63 : vector<1x128xf32> to vector<5x128xf32>
    %127 = arith.cmpf oeq, %125, %126 : vector<5x128xf32>
    %128 = arith.extui %127 : vector<5x128xi1> to vector<5x128xi32>
    %129 = arith.sitofp %128 : vector<5x128xi32> to vector<5x128xf32>
    %130 = arith.mulf %129, %61 : vector<5x128xf32>
    %cst_25 = arith.constant dense<0.000000e+00> : vector<128xf32>
    %131 = vector.multi_reduction <add>, %130, %cst_25 [0] : vector<5x128xf32> to vector<128xf32>
    %132 = vector.shape_cast %131 : vector<128xf32> to vector<1x128xf32>
    %133 = arith.subf %123, %132 : vector<1x128xf32>
    %cst_26 = arith.constant 1.000000e+00 : f32
    %134 = vector.broadcast %cst_26 : f32 to vector<1x128xf32>
    %135 = arith.mulf %134, %133 : vector<1x128xf32>
    %136 = vector.shape_cast %135 : vector<1x128xf32> to vector<1x1x128xf32>
    %cst_27 = arith.constant dense<0.000000e+00> : vector<1xf32>
    %137 = vector.multi_reduction <add>, %136, %cst_27 [1, 2] : vector<1x1x128xf32> to vector<1xf32>
    %138 = vector.shape_cast %137 : vector<1xf32> to vector<1x1x1xf32>
    %139 = vector.extract %138[0, 0, 0] : f32 from vector<1x1x1xf32>
    %cst_28 = arith.constant 1.280000e+02 : f32
    %140 = arith.divf %139, %cst_28 : f32
    %141 = arith.addf %33, %58 : f32
    %142 = arith.addf %141, %114 : f32
    %143 = arith.addf %142, %140 : f32
    %144 = tpu.iota {dimensions = array<i32: 1>} : vector<8x128xi32>
    %c0_i32 = arith.constant 0 : i32
    %145 = vector.broadcast %c0_i32 : i32 to vector<8x128xi32>
    %146 = arith.cmpi eq, %144, %145 : vector<8x128xi32>
    %cst_29 = arith.constant 0.000000e+00 : f32
    %147 = vector.broadcast %33 : f32 to vector<8x128xf32>
    %148 = vector.broadcast %cst_29 : f32 to vector<8x128xf32>
    %149 = arith.select %146, %147, %148 : vector<8x128xi1>, vector<8x128xf32>
    %c1_i32 = arith.constant 1 : i32
    %150 = vector.broadcast %c1_i32 : i32 to vector<8x128xi32>
    %151 = arith.cmpi eq, %144, %150 : vector<8x128xi32>
    %cst_30 = arith.constant 0.000000e+00 : f32
    %152 = vector.broadcast %58 : f32 to vector<8x128xf32>
    %153 = vector.broadcast %cst_30 : f32 to vector<8x128xf32>
    %154 = arith.select %151, %152, %153 : vector<8x128xi1>, vector<8x128xf32>
    %155 = arith.addf %149, %154 : vector<8x128xf32>
    %c2_i32 = arith.constant 2 : i32
    %156 = vector.broadcast %c2_i32 : i32 to vector<8x128xi32>
    %157 = arith.cmpi eq, %144, %156 : vector<8x128xi32>
    %cst_31 = arith.constant 0.000000e+00 : f32
    %158 = vector.broadcast %114 : f32 to vector<8x128xf32>
    %159 = vector.broadcast %cst_31 : f32 to vector<8x128xf32>
    %160 = arith.select %157, %158, %159 : vector<8x128xi1>, vector<8x128xf32>
    %161 = arith.addf %155, %160 : vector<8x128xf32>
    %c3_i32 = arith.constant 3 : i32
    %162 = vector.broadcast %c3_i32 : i32 to vector<8x128xi32>
    %163 = arith.cmpi eq, %144, %162 : vector<8x128xi32>
    %cst_32 = arith.constant 0.000000e+00 : f32
    %164 = vector.broadcast %140 : f32 to vector<8x128xf32>
    %165 = vector.broadcast %cst_32 : f32 to vector<8x128xf32>
    %166 = arith.select %163, %164, %165 : vector<8x128xi1>, vector<8x128xf32>
    %167 = arith.addf %161, %166 : vector<8x128xf32>
    %c4_i32 = arith.constant 4 : i32
    %168 = vector.broadcast %c4_i32 : i32 to vector<8x128xi32>
    %169 = arith.cmpi eq, %144, %168 : vector<8x128xi32>
    %cst_33 = arith.constant 0.000000e+00 : f32
    %170 = vector.broadcast %143 : f32 to vector<8x128xf32>
    %171 = vector.broadcast %cst_33 : f32 to vector<8x128xf32>
    %172 = arith.select %169, %170, %171 : vector<8x128xi1>, vector<8x128xf32>
    %173 = arith.addf %167, %172 : vector<8x128xf32>
    %c0_34 = arith.constant 0 : index
    %c0_35 = arith.constant 0 : index
    %174 = vector.load %arg2[%c0_34, %c0_35] : memref<8x128xf32, #tpu.memory_space<vmem>>, vector<8x128xf32>
    tpu.vector_store %arg2[%c0_34, %c0_35], %173 {strides = array<i32>} : memref<8x128xf32, #tpu.memory_space<vmem>>, vector<8x128xf32>,
    return
  }
}

</mosaic_0001>

<bundles_post_ra>
// kernel: faster_rcnn_trainer_losses.1
= control target key start
LH: loop header
LB: loop body
LE: loop exit
PB: predicated region body
PF: predicated region fallthrough
CT: control target
= control target key end

     0   :  { %vm33_vm0 = vcmask 1040384   ;;  %v54_v3 = vlaneseq  ;;  %vm93_vm1 = vcmask 1041408   ;;  %v409_v5 = vmov 0.0   ;;  %s557_s0 = inlined_call_operand.vmem [shape: f32[11,256], index: 0, kind: input, shape index: {}]   ;;  %s558_s1 = inlined_call_operand.vmem [shape: f32[30,128], index: 1, kind: input, shape index: {}]   ;;  %s559_s2 = inlined_call_operand.vmem [shape: f32[8,128], index: 2, kind: output, shape index: {}]  }
   0x1   :  { %v428_v0 = vld [vmem:[%s557_s0 + $0x10] sm:$0x7]  ;;  %v433_v1 = vld [vmem:[%s557_s0 + $0x18] sm:$0x7]  ;;  %v11_v2 = vld [vmem:[%s557_s0] sm:$0xff]  ;;  %vm270_vm6 = vcmask 1047556  }
   0x2   :  { %vm21_vm2 = vcmp.ge.f32.partialorder %v428_v0, 0.0  ;;  %vm22_vm3 = vcmp.ge.f32.partialorder %v433_v1, 0.0  ;;  %v12_v4 = vld [vmem:[%s557_s0 + $0x8] sm:$0xff]  ;;  %vm15_vm4 = vcmp.gt.f32.partialorder %v428_v0, 0.0  ;;  %vm16_vm5 = vcmp.gt.f32.partialorder %v433_v1, 0.0  ;;  %v458_v14 = vld [vmem:[%s558_s1 + $0x10] sm:$0xff] }
   0x3   :  { %v446_v6 = vsel %vm21_vm2, 1.0, %v409_v5  ;;  %v449_v7 = vsel %vm22_vm3, 1.0, %v409_v5  ;;  %v366_v8 = vsel %vm15_vm4, 1.0, %v409_v5  ;;  %v367_v9 = vsel %vm16_vm5, 1.0, %v409_v5  ;;  %v470_v18 = vld [vmem:[%s558_s1 + $0x18] sm:$0x3f] }
   0x4   :  { %v29_v10 = vrot.slane %v446_v6, 2  ;;  %v30_v11 = vrot.slane %v449_v7, 2  ;;  %v48_v12 = vrot.slane %v11_v2, 4  ;;  %v49_v13 = vrot.slane %v12_v4, 4 }
   0x5   :  { %v461_v15 = vshrl.u32 %v54_v3, 7  ;;  %v94_v16 = vsel %vm93_vm1, %v428_v0, -inf  ;;  %v101_v17 = vsel %vm93_vm1, %v433_v1, -inf  ;;  %v271_v27 = vsel %vm270_vm6, %v458_v14, -inf }
   0x6   :  { %v34_v19 = vsel %vm33_vm0, %v29_v10, 0.0  ;;  %v35_v20 = vsel %vm33_vm0, %v30_v11, 0.0  ;;  %v52_v21 = vsub.f32 %v11_v2, %v48_v12  ;;  %v53_v22 = vsub.f32 %v12_v4, %v49_v13 }
   0x7   :  { %v36_v23 = vadd.f32 %v35_v20, %v34_v19  ;;  %v56_v24 = vsub.s32 2, %v461_v15  ;;  %v95_v25 = vrot.slane %v94_v16, 4  ;;  %v102_v26 = vrot.slane %v101_v17, 4 }
   0x8   :  { %v272_v28 = vsel %vm33_vm0, %v470_v18, -inf  ;;  %vm76_vm9 = vcmask 1043456   ;;  %v136_v4 = vcvt.s32.f32 %v461_v15  ;;  %v499_v20 = vsub.s32 5, %v461_v15 }
   0x9   :  { %37 = vadd.xlane.f32.xlu0 %v36_v23  ;;  %v57_v29 = vrot.slane %v366_v8, %v56_v24  ;;  %v61_v30 = vrot.slane %v367_v9, %v56_v24  ;;  %v96_v31 = vmax.f32 %v94_v16, %v95_v25  ;;  %v103_v32 = vmax.f32 %v101_v17, %v102_v26 }
   0xa   :  { %v273_v33 = vmax.f32 %v271_v27, %v272_v28  ;;  %v140_v8 = vrot.slane %v428_v0, %v56_v24  ;;  %v144_v10 = vrot.slane %v433_v1, %v56_v24  ;;  %vm210_vm12 = vcmp.eq.f32.partialorder %v470_v18, 2.0 }
   0xb   :  { %v62_v34 = vmul.f32 %v57_v29, %v52_v21  ;;  %v63_v35 = vmul.f32 %v61_v30, %v53_v22  ;;  %v97_v36 = vrot.slane %v96_v31, 2  ;;  %v104_v37 = vrot.slane %v103_v32, 2 }
   0xc   :  { %v274_v38 = vrot.slane %v273_v33, 4  ;;  %vm145_vm10 = vcmp.eq.f32.partialorder %v136_v4, %v140_v8  ;;  %vm146_vm11 = vcmp.eq.f32.partialorder %v136_v4, %v144_v10  ;;  %v306_v24 = vrot.slane %v470_v18, %v499_v20 }
   0xd   :  { %v64_v39 = vand.u32 2147483647, %v62_v34  ;;  %v65_v40 = vand.u32 2147483647, %v63_v35  ;;  %v68_v41 = vmul.f32 4.5, %v62_v34  ;;  %v69_v42 = vmul.f32 4.5, %v63_v35 }
   0xe   :  { %v98_v43 = vmax.f32 %v96_v31, %v97_v36  ;;  %v105_v44 = vmax.f32 %v103_v32, %v104_v37  ;;  %v275_v51 = vmax.f32 %v273_v33, %v274_v38  ;;  %v372_v16 = vsel %vm145_vm10, 1.0, %v409_v5 }
   0xf   :  { %vm66_vm7 = vcmp.lt.f32.partialorder %v64_v39, 0.11111111  ;;  %vm67_vm8 = vcmp.lt.f32.partialorder %v65_v40, 0.11111111  ;;  %v70_v45 = vmul.f32 %v68_v41, %v62_v34  ;;  %v71_v46 = vmul.f32 %v69_v42, %v63_v35  ;;  %v193_v35 = vld [vmem:[%s558_s1] sm:$0xff] }
  0x10   :  { %v370_v47 = vadd.f32 -0.055555556, %v64_v39  ;;  %v371_v48 = vadd.f32 -0.055555556, %v65_v40  ;;  %v99_v49 = vrot.slane %v98_v43, 1  ;;  %v106_v50 = vrot.slane %v105_v44, 1 }
  0x11   :  { %v276_v61 = vrot.slane %v275_v51, 2  ;;  %v373_v21 = vsel %vm146_vm11, 1.0, %v409_v5  ;;  %v151_v22 = vmul.f32 %v372_v16, %v428_v0  ;;  %vm197_vm13 = vcmp.eq.f32.partialorder %v470_v18, 1.0 }
  0x12   :  { %v74_v52 = vsel %vm66_vm7, %v70_v45, %v370_v47  ;;  %v75_v53 = vsel %vm67_vm8, %v71_v46, %v371_v48  ;;  %v478_v54 = vmax.f32 %v98_v43, %v99_v49  ;;  %v480_v55 = vmax.f32 %v105_v44, %v106_v50 }
  0x13   :  { %v77_v56 = vsel %vm76_vm9, %v74_v52, 0.0  ;;  %v78_v57 = vsel %vm76_vm9, %v75_v53, 0.0  ;;  %v277_v2 = vmax.f32 %v275_v51, %v276_v61  ;;  %v152_v23 = vmul.f32 %v373_v21, %v433_v1 }
  0x14   :  { %v79_v58 = vadd.f32 %v78_v57, %v77_v56  ;;  %v108_v59 = vsub.f32 %v428_v0, %v478_v54  ;;  %v109_v60 = vsub.f32 %v433_v1, %v480_v55  ;;  %v213_v26 = vrot.slane %v470_v18, 1  ;;  %v194_v0 = vld [vmem:[%s558_s1 + $0x8] sm:$0xff] }
  0x15   :  { %v278_v9 = vrot.slane %v277_v2, 1  ;;  %v153_v28 = vsel %vm93_vm1, %v151_v22, 0.0  ;;  %v375_v29 = vsel %vm210_vm12, 1.0, %v409_v5  ;;  %v201_v31 = vrot.slane %v470_v18, 5 }
  0x16   :  { %80 = vadd.xlane.f32.xlu0 %v79_v58  ;;  %v110_v62 = vmul.f32 1.442695, %v108_v59  ;;  %v112_v63 = vmul.f32 1.442695, %v109_v60  ;;  %v160_v33 = vsel %vm93_vm1, %v152_v23, 0.0  ;;  %vm518_vm14 = vcmp.eq.f32.partialorder %v136_v4, %v306_v24 }
  0x17   :  { %v491_v11 = vmax.f32 %v277_v2, %v278_v9  ;;  %v374_v36 = vsel %vm197_vm13, 1.0, %v409_v5  ;;  %v154_v38 = vrot.slane %v153_v28, 4  ;;  %v215_v39 = vsub.f32 %v194_v0, %v213_v26 }
  0x18   :  { %393 = vpow2.f32 %v110_v62  ;;  %v219_v40 = vrot.slane %v375_v29, %v499_v20  ;;  %v311_v42 = vrot.slane %v458_v14, 4  ;;  %v312_v43 = vrot.slane %v470_v18, 4 }
  0x19   :  { %395 = vpow2.f32 %v112_v63  ;;  %v280_v12 = vsub.f32 %v458_v14, %v491_v11  ;;  %v281_v13 = vsub.f32 %v470_v18, %v491_v11  ;;  %vm225_vm15 = vcmp.eq.f32.partialorder %v470_v18, 3.0 }
  0x1a   :  { %v203_v45 = vsub.f32 %v193_v35, %v201_v31  ;;  %v207_v46 = vrot.slane %v374_v36, %v499_v20  ;;  %vm292_vm2 = vcmask 1044480   ;;  %v161_v49 = vrot.slane %v160_v33, 4 }
  0x1b   :  { %v282_v17 = vmul.f32 1.442695, %v280_v12  ;;  %v284_v19 = vmul.f32 1.442695, %v281_v13  ;;  %v220_v50 = vmul.f32 %v219_v40, %v215_v39  ;;  %v376_v51 = vsel %vm225_vm15, 1.0, %v409_v5 }
  0x1c   :  { %v155_v56 = vadd.f32 %v154_v38, %v153_v28  ;;  %v379_v57 = vsel %vm518_vm14, 1.0, %v409_v5  ;;  %v208_v62 = vmul.f32 %v207_v46, %v203_v45  ;;  %v228_v4 = vsub.f32 %v194_v0, %v201_v31 }
  0x1d   :  { %397 = vpow2.f32 %v282_v17  ;;  %v232_v8 = vrot.slane %v376_v51, %v499_v20  ;;  %v222_v10 = vrot.slane %v220_v50, 4  ;;  %v238_v12 = vsub.f32 %v458_v14, %v213_v26 }
  0x1e   :  { %399 = vpow2.f32 %v284_v19  ;;  %v162_v17 = vadd.f32 %v161_v49, %v160_v33  ;;  %v156_v23 = vrot.slane %v155_v56, 2 }
  0x1f   :  { %v224_v24 = vadd.f32 %v222_v10, %v208_v62 }
  0x25   :  { %v394_v25 = vpop.eup %393 }
  0x26   :  { %v396_v15 = vpop.eup %395  ;;  %v114_v27 = vsel %vm93_vm1, %v394_v25, 0.0  ;;  %v233_v25 = vmul.f32 %v232_v8, %v228_v4 }
  0x27   :  { %v115_v1 = vrot.slane %v114_v27, 4  ;;  %v121_v30 = vsel %vm93_vm1, %v396_v15, 0.0  ;;  %vm235_vm1 = vcmp.eq.f32.partialorder %v470_v18, 4.0  ;;  %v313_v18 = vsel %vm76_vm9, %v311_v42, %v312_v43 }
  0x28   :  { %v122_v32 = vrot.slane %v121_v30, 4  ;;  %v377_v58 = vsel %vm235_vm1, 1.0, %v409_v5  ;;  %v315_v21 = vmul.f32 %v379_v57, %v313_v18  ;;  %v234_v0 = vadd.f32 %v233_v25, %v224_v24 }
  0x29   :  { %v116_v37 = vadd.f32 %v115_v1, %v114_v27  ;;  %v242_v13 = vrot.slane %v377_v58, %v499_v20  ;;  %v163_v27 = vrot.slane %v162_v17, 2  ;;  %v157_v20 = vadd.f32 %v156_v23, %v155_v56 }
  0x2a   :  { %v123_v41 = vadd.f32 %v122_v32, %v121_v30  ;;  %v398_v52 = vpop.eup %397  ;;  %v316_v14 = vsel %vm292_vm2, %v315_v21, 0.0 }
  0x2b   :  { %v117_v44 = vrot.slane %v116_v37, 2  ;;  %v400_v59 = vpop.eup %399  ;;  %v288_v61 = vrot.slane %v398_v52, 4  ;;  %v243_v15 = vmul.f32 %v242_v13, %v238_v12  ;;  %v164_v1 = vadd.f32 %v163_v27, %v162_v17 }
  0x2c   :  { %v124_v47 = vrot.slane %v123_v41, 2  ;;  %v289_v2 = vrot.slane %v400_v59, 4  ;;  %v317_v31 = vrot.slane %v316_v14, 4  ;;  %v158_v33 = vrot.slane %v157_v20, 1 }
  0x2d   :  { %v118_v48 = vadd.f32 %v117_v44, %v116_v37  ;;  %v245_v29 = vrot.slane %v243_v15, 4  ;;  %v165_v35 = vrot.slane %v164_v1, 1 }
  0x2e   :  { %v125_v53 = vadd.f32 %v124_v47, %v123_v41  ;;  %v290_v5 = vsel %vm76_vm9, %v288_v61, %v289_v2  ;;  %v318_v37 = vadd.f32 %v317_v31, %v316_v14  ;;  %v159_v41 = vadd.f32 %v158_v33, %v157_v20 }
  0x2f   :  { %v119_v60 = vrot.slane %v118_v48, 1  ;;  %v293_v19 = vsel %vm292_vm2, %v290_v5, 0.0  ;;  %v247_v34 = vadd.f32 %v245_v29, %v234_v0  ;;  %v166_v45 = vadd.f32 %v165_v35, %v164_v1 }
  0x30   :  { %v126_v63 = vrot.slane %v125_v53, 1  ;;  %v294_v22 = vrot.slane %v293_v19, 4  ;;  %v319_v46 = vrot.slane %v318_v37, 2 }
  0x31   :  { %v120_v9 = vadd.f32 %v119_v60, %v118_v48  ;;  %v248_v42 = vand.u32 2147483647, %v247_v34  ;;  %v250_v43 = vmul.f32 0.5, %v247_v34 }
  0x32   :  { %v127_v16 = vadd.f32 %v126_v63, %v125_v53  ;;  %v295_v28 = vadd.f32 %v294_v22, %v293_v19  ;;  %v320_v53 = vadd.f32 %v319_v46, %v318_v37 }
  0x33   :  { %401 = vlog2.f32 %v120_v9  ;;  %v251_v50 = vmul.f32 %v250_v43, %v247_v34  ;;  %v378_v51 = vadd.f32 -0.5, %v248_v42  ;;  %vm249_vm3 = vcmp.lt.f32.partialorder %v248_v42, 1.0 }
  0x34   :  { %403 = vlog2.f32 %v127_v16  ;;  %v296_v26 = vrot.slane %v295_v28, 2  ;;  %v321_v61 = vrot.slane %v320_v53, 1 }
  0x35   :  { %v253_v59 = vsel %vm249_vm3, %v251_v50, %v378_v51 }
  0x36   :  { %v297_v30 = vadd.f32 %v296_v26, %v295_v28  ;;  %v255_v62 = vrot.slane %v253_v59, 4  ;;  %v322_v4 = vadd.f32 %v321_v61, %v320_v53 }
  0x38   :  { %v298_v32 = vrot.slane %v297_v30, 1 }
  0x3a   :  { %v299_v36 = vadd.f32 %v298_v32, %v297_v30 }
  0x3c   :  { %405 = vlog2.f32 %v299_v36 }
  0x40   :  { %v402_v38 = vpop.eup %401 }
  0x41   :  { %v404_v39 = vpop.eup %403  ;;  %v129_v40 = vmul.f32 0.6931472, %v402_v38 }
  0x42   :  { %v131_v44 = vmul.f32 0.6931472, %v404_v39 }
  0x43   :  { %v132_v47 = vadd.f32 %v129_v40, %v478_v54 }
  0x44   :  { %v133_v48 = vadd.f32 %v131_v44, %v480_v55 }
  0x45   :  { %v167_v49 = vsub.f32 %v132_v47, %v159_v41 }
  0x46   :  { %v168_v52 = vsub.f32 %v133_v48, %v166_v45  ;;  %v341_v45 = vand.u32 127, %v54_v3 }
  0x47   :  { %v169_v56 = vmul.f32 %v446_v6, %v167_v49  ;;  %v257_v6 = vsel %vm76_vm9, %v255_v62, 0.0 }
  0x48   :  { %v170_v57 = vmul.f32 %v449_v7, %v168_v52  ;;  %vm345_vm4 = vcmp.eq.s32.totalorder %v341_v45, 1  ;;  %vm349_vm5 = vcmp.eq.s32.totalorder %v341_v45, 2  ;;  %vm353_vm6 = vcmp.eq.s32.totalorder %v341_v45, 3 }
  0x49   :  { %v173_v58 = vrot.slane %v169_v56, 2  ;;  %v406_v55 = vpop.eup %405  ;;  %vm357_vm7 = vcmp.eq.s32.totalorder %v341_v45, 4 }
  0x4a   :  { %v174_v60 = vrot.slane %v170_v57, 2  ;;  %v301_v2 = vmul.f32 0.6931472, %v406_v55 }
  0x4b   :  { %v177_v18 = vsel %vm33_vm0, %v173_v58, 0.0 }
  0x4c   :  { %v178_v54 = vsel %vm33_vm0, %v174_v60, 0.0  ;;  %v302_v8 = vadd.f32 %v301_v2, %v491_v11 }
  0x4d   :  { %v179_v63 = vadd.f32 %v178_v54, %v177_v18 }
  0x4e   :  { %v323_v9 = vsub.f32 %v302_v8, %v322_v4 }
  0x4f   :  { %180 = vadd.xlane.f32.xlu1 %v179_v63 }
  0x50   :  { %v324_v7 = vsel %vm33_vm0, %v323_v9, 0.0  ;;  %vm342_vm0 = vcmp.eq.s32.totalorder %v341_v45, 0 }
  0x51   :  { %325 = vadd.xlane.f32.xlu0 %v324_v7 }
  0x53   :  { %258 = vadd.xlane.f32.xlu1 %v257_v6 }
  0x92   :  { %v38_v10 = vpop.xlane.xlu0 %37 }
  0x93   :  { %v39_v12 = vrot.slane %v38_v10, 4 }
  0x95   :  { %v40_v13 = vadd.f32 %v39_v12, %v38_v10 }
  0x97   :  { %v41_v16 = vrot.slane %v40_v13, 2 }
  0x99   :  { %v42_v17 = vadd.f32 %v41_v16, %v40_v13 }
  0x9b   :  { %v43_v5 = vrot.slane %v42_v17, 1 }
  0x9d   :  { %v44_v19 = vadd.f32 %v43_v5, %v42_v17 }
  0x9f   :  { %380 = vpush %v44_v19  ;;  %v81_v21 = vpop.xlane.xlu0 %80 }
  0xa0   :  { %v82_v22 = vrot.slane %v81_v21, 4 }
  0xa2   :  { %v83_v23 = vadd.f32 %v82_v22, %v81_v21 }
  0xa4   :  { %v84_v24 = vrot.slane %v83_v23, 2 }
  0xa6   :  { %v85_v11 = vadd.f32 %v84_v24, %v83_v23 }
  0xa8   :  { %v86_v25 = vrot.slane %v85_v11, 1 }
  0xaa   :  { %v87_v15 = vadd.f32 %v86_v25, %v85_v11 }
  0xac   :  { %382 = vpush %v87_v15 }
  0xd0   :  { %s381_s1 = spop %380 }
  0xd1   :  { %v89_v27 = vstv %s381_s1 }
  0xd2   :  { %407 = vrcp.f32 %v89_v27 }
  0xd8   :  { %v181_v28 = vpop.xlane.xlu1 %180 }
  0xd9   :  { %v182_v14 = vrot.slane %v181_v28, 4 }
  0xda   :  { %v326_v1 = vpop.xlane.xlu0 %325 }
  0xdb   :  { %v183_v26 = vadd.f32 %v182_v14, %v181_v28  ;;  %v327_v31 = vrot.slane %v326_v1, 4 }
  0xdc   :  { %v259_v20 = vpop.xlane.xlu1 %258 }
  0xdd   :  { %v184_v0 = vrot.slane %v183_v26, 2  ;;  %v260_v29 = vrot.slane %v259_v20, 4  ;;  %v328_v34 = vadd.f32 %v327_v31, %v326_v1  ;;  %s383_s24 = spop %382 }
  0xdf   :  { %v408_v30 = vpop.eup %407  ;;  %v261_v32 = vadd.f32 %v260_v29, %v259_v20  ;;  %v185_v33 = vadd.f32 %v184_v0, %v183_v26  ;;  %v329_v37 = vrot.slane %v328_v34, 2 }
  0xe0   :  { %384 = vpush %v408_v30 }
  0xe1   :  { %v262_v35 = vrot.slane %v261_v32, 2  ;;  %v186_v36 = vrot.slane %v185_v33, 1  ;;  %v330_v40 = vadd.f32 %v329_v37, %v328_v34 }
  0xe3   :  { %v263_v38 = vadd.f32 %v262_v35, %v261_v32  ;;  %v187_v39 = vadd.f32 %v186_v36, %v185_v33  ;;  %v331_v43 = vrot.slane %v330_v40, 1 }
  0xe5   :  { %386 = vpush %v187_v39  ;;  %v264_v41 = vrot.slane %v263_v38, 1  ;;  %v332_v44 = vadd.f32 %v331_v43, %v330_v40 }
  0xe7   :  { %v265_v42 = vadd.f32 %v264_v41, %v263_v38 }
  0xe9   :  { %388 = vpush %v265_v42 }
  0xea   :  { %390 = vpush %v332_v44 }
 0x111   :  { %s385_s25 = spop %384 }
 0x112   :  { %s92_s26 = smul.f32 %s385_s25, %s383_s24 }
 0x114   :  { %v343_v46 = vstv %s92_s26 }
 0x115   :  { %v344_v47 = vsel %vm342_vm0, %v343_v46, 0.0 }
 0x116   :  { %s387_s27 = spop %386 }
 0x117   :  { %s192_s28 = smul.f32 %s387_s27, %s385_s25 }
 0x119   :  { %s337_s29 = sadd.f32 %s192_s28, %s92_s26  ;;  %v346_v48 = vstv %s192_s28 }
 0x11a   :  { %v347_v49 = vsel %vm345_vm4, %v346_v48, 0.0  ;;  %s389_s30 = spop %388 }
 0x11b   :  { %v348_v50 = vadd.f32 %v347_v49, %v344_v47  ;;  %s269_s3 = smul.f32 0.0078125, %s389_s30  ;;  %s391_s4 = spop %390 }
 0x11c   :  { %s336_s6 = smul.f32 0.0078125, %s391_s4 }
 0x11d   :  { %s338_s5 = sadd.f32 %s337_s29, %s269_s3  ;;  %v350_v51 = vstv %s269_s3 }
 0x11e   :  { %v351_v3 = vsel %vm349_vm5, %v350_v51, 0.0  ;;  %v354_v53 = vstv %s336_s6 }
 0x11f   :  { %v352_v52 = vadd.f32 %v351_v3, %v348_v50  ;;  %s339_s7 = sadd.f32 %s338_s5, %s336_s6  ;;  %v355_v56 = vsel %vm353_vm6, %v354_v53, 0.0 }
 0x121   :  { %v356_v57 = vadd.f32 %v355_v56, %v352_v52  ;;  %v358_v58 = vstv %s339_s7 }
 0x122   :  { %v359_v59 = vsel %vm357_vm7, %v358_v58, 0.0 }
 0x123   :  { %v360_v60 = vadd.f32 %v359_v59, %v356_v57 }
 0x125   :  { %361 = vst [vmem:[%s559_s2] sm:$0xff] %v360_v60 }

</bundles_post_ra>
